<compile_context>
chip_gen: v7x
topology: tpu7x:2x2x1
jax: 0.10.0
libtpu: 0.0.40
codegen_flags: <defaults>
</compile_context>

<pallas_src>
import functools
import math

import jax
import jax.numpy as jnp
from jax.experimental import pallas as pl
from jax.experimental.pallas import tpu as pltpu

LN_EPS = 1e-5          # nn.LayerNorm default
NEG_SLOPE = 0.01       # leaky_relu negative_slope
H1, H2 = 512, 256      # hidden widths


def _leaky_relu(x, slope=NEG_SLOPE):
    # Bit-identical to where(x>0, x, slope*x) for 0 < slope < 1, cheaper on the VPU.
    return jnp.maximum(x, slope * x)


def _round_up(n, m):
    return ((n + m - 1) // m) * m


def _vpu_has_bf16():
    """bf16 VALU exists on v6e and later; absent on v2-v5 (keep elementwise f32 there)."""
    try:
        kind = jax.devices()[0].device_kind.lower()
    except Exception:
        return False
    return not any(tag in kind for tag in ("v2", "v3", "v4", "v5"))


def _select_tile(B, tb_max):
    """Pick batch tile TB and padded batch B_pad.

    Balances padded-row waste against fixed per-grid-step overhead (~0.35 us ~= a few
    hundred rows of work at these layer widths) and mildly penalizes single-step grids
    so v7x megacore gets work on both TensorCores for large batches.
    """
    tb_max = max(int(tb_max), 128)
    if B <= 128:
        tb = _round_up(max(B, 1), 16)     # bf16 packs 16 sublanes per vreg
        return tb, tb
    best_tb, best_pad, best_score = None, None, None
    for tb in (128, 256, 512, 1024, 2048):
        if tb > tb_max:
            continue
        b_pad = _round_up(B, tb)
        n_tiles = b_pad // tb
        score = b_pad + 384 * n_tiles + (384 if n_tiles == 1 else 0)
        if best_score is None or score < best_score:
            best_tb, best_pad, best_score = tb, b_pad, score
    return best_tb, best_pad


def critic_kernel(x_ref, w1_ref, b1_ref, g_ref, beta_ref, w2_ref, b2_ref,
                  w3_ref, b3_ref, q_ref, *, bf16_elementwise):
    # ---- fc1 (obs+actions already concatenated): one bf16 MXU matmul, f32 acc ----
    h1 = jnp.dot(x_ref[...], w1_ref[...],
                 preferred_element_type=jnp.float32) + b1_ref[...]      # (TB, 512) f32

    # ---- LayerNorm(512): two-pass stats, f32 (matches nn.LayerNorm biased var) ---
    mean = jnp.mean(h1, axis=-1, keepdims=True)
    d = h1 - mean
    var = jnp.mean(d * d, axis=-1, keepdims=True)
    h1n = d * jax.lax.rsqrt(var + LN_EPS)

    # ---- affine + leaky_relu (bf16 on chips with bf16 VPU; f32 otherwise) --------
    if bf16_elementwise:
        y = (h1n.astype(jnp.bfloat16) * g_ref[...].astype(jnp.bfloat16)
             + beta_ref[...].astype(jnp.bfloat16))
        a1 = _leaky_relu(y)                                             # bf16
    else:
        a1 = _leaky_relu(h1n * g_ref[...] + beta_ref[...]).astype(jnp.bfloat16)

    # ---- fc2: bf16 MXU matmul, f32 accumulate --------------------------------------
    h2 = jnp.dot(a1, w2_ref[...], preferred_element_type=jnp.float32)   # (TB, 256) f32
    if bf16_elementwise:
        a2 = _leaky_relu(h2.astype(jnp.bfloat16) + b2_ref[...].astype(jnp.bfloat16))
    else:
        a2 = _leaky_relu(h2 + b2_ref[...]).astype(jnp.bfloat16)

    # ---- fc3 on the MXU, transposed so q lands lane-dense: (1,256)x(TB,256)^T ------
    q = jax.lax.dot_general(w3_ref[...], a2,
                            dimension_numbers=(((1,), (1,)), ((), ())),
                            preferred_element_type=jnp.float32)         # (1, TB) f32
    q_ref[...] = (q + b3_ref[...]).reshape(q_ref.shape)


def critic_forward(obs, actions, params, *, tb_max=1024, bf16_elementwise=None):
    """obs: (B, obs_dim), actions: (B, act_dim) -> q: (B, 1) float32."""
    w1, b1, g, beta, w2, b2, w3, b3 = params
    B, obs_dim = obs.shape
    act_dim = actions.shape[1]
    D = obs_dim + act_dim
    assert w1.shape == (D, H1)

    if bf16_elementwise is None:
        bf16_elementwise = _vpu_has_bf16()

    TB, B_pad = _select_tile(B, tb_max)
    pad = B_pad - B
    n_tiles = B_pad // TB

    # Fold the concat into the cast/pad (no separate (B, D) HBM round-trip).
    x = jnp.concatenate([obs, actions], axis=1).astype(jnp.bfloat16)
    x = jnp.pad(x, ((0, pad), (0, 0)))

    flops = 2 * B_pad * (D * H1 + H1 * H2 + H2)
    bytes_accessed = int(
        sum(int(a.size) * a.dtype.itemsize
            for a in (x, w1, b1, g, beta, w2, b2, w3, b3)) + B_pad * 4)

    kernel = functools.partial(critic_kernel, bf16_elementwise=bool(bf16_elementwise))

    tile = lambda i: (i, 0)        # per-grid-step batch tile
    resident = lambda i: (0, 0)    # weights: same block every step -> VMEM-resident

    grid_spec = pltpu.PrefetchScalarGridSpec(
        num_scalar_prefetch=0,
        grid=(n_tiles,),
        in_specs=[
            pl.BlockSpec((TB, D), tile),
            pl.BlockSpec((D, H1), resident),
            pl.BlockSpec((1, H1), resident),
            pl.BlockSpec((1, H1), resident),
            pl.BlockSpec((1, H1), resident),
            pl.BlockSpec((H1, H2), resident),
            pl.BlockSpec((1, H2), resident),
            pl.BlockSpec((1, H2), resident),
            pl.BlockSpec((1, 1), resident),
        ],
        out_specs=pl.BlockSpec((1, 1, TB), lambda i: (i, 0, 0)),
    )

    q = pl.pallas_call(
        kernel,
        out_shape=jax.ShapeDtypeStruct((n_tiles, 1, TB), jnp.float32),
        grid_spec=grid_spec,
        compiler_params=pltpu.CompilerParams(
            dimension_semantics=("parallel",),     # batch tiles independent (v7x megacore)
            vmem_limit_bytes=32 * 1024 * 1024,     # well above footprint; safe on v5e/v6e/v7x
        ),
        cost_estimate=pl.CostEstimate(
            flops=flops, transcendentals=B_pad, bytes_accessed=bytes_accessed),
    )(x, w1, b1, g, beta, w2, b2, w3, b3)

    return q.reshape(-1)[:B].reshape(B, 1)


def kaiming_uniform_leaky(key, out_f, in_f, a=NEG_SLOPE):
    """torch.nn.init.kaiming_uniform_(w, a=0.01, nonlinearity='leaky_relu'), torch layout."""
    gain = math.sqrt(2.0 / (1.0 + a * a))
    bound = gain * math.sqrt(3.0 / in_f)
    return jax.random.uniform(key, (out_f, in_f), jnp.float32, -bound, bound)


def init_critic_params(key, total_obs_dim, total_action_dim):
    d_in = total_obs_dim + total_action_dim
    k1, k2, k3 = jax.random.split(key, 3)
    w1 = kaiming_uniform_leaky(k1, H1, d_in).T.astype(jnp.bfloat16)   # (d_in, 512)
    b1 = jnp.zeros((1, H1), jnp.float32)
    gamma = jnp.ones((1, H1), jnp.float32)                            # LayerNorm affine
    beta = jnp.zeros((1, H1), jnp.float32)
    w2 = kaiming_uniform_leaky(k2, H2, H1).T.astype(jnp.bfloat16)     # (512, 256)
    b2 = jnp.zeros((1, H2), jnp.float32)
    w3 = kaiming_uniform_leaky(k3, 1, H2).astype(jnp.bfloat16)        # (1, 256) row
    b3 = jnp.zeros((1, 1), jnp.float32)
    return (w1, b1, gamma, beta, w2, b2, w3, b3)


def critic_reference(obs, actions, params, *, bf16_elementwise):
    """Pure-JAX reference mirroring the kernel's bf16 quantization points."""
    w1, b1, g, beta, w2, b2, w3, b3 = params
    f32, bf16 = jnp.float32, jnp.bfloat16
    x = jnp.concatenate([obs, actions], axis=1).astype(bf16)
    h1 = x.astype(f32) @ w1.astype(f32) + b1
    mean = jnp.mean(h1, axis=-1, keepdims=True)
    d = h1 - mean
    var = jnp.mean(d * d, axis=-1, keepdims=True)
    h1n = d / jnp.sqrt(var + LN_EPS)
    if bf16_elementwise:
        a1 = _leaky_relu(h1n.astype(bf16) * g.astype(bf16) + beta.astype(bf16))
    else:
        a1 = _leaky_relu(h1n * g + beta).astype(bf16)
    h2 = a1.astype(f32) @ w2.astype(f32)
    if bf16_elementwise:
        a2 = _leaky_relu(h2.astype(bf16) + b2.astype(bf16))
    else:
        a2 = _leaky_relu(h2 + b2).astype(bf16)
    return a2.astype(f32) @ w3.astype(f32).T + b3


if __name__ == "__main__":
    key = jax.random.PRNGKey(0)
    k_params, k_obs, k_act, k_obs2, k_act2 = jax.random.split(key, 5)

    total_obs_dim = 24
    total_action_dim = 8
    params = init_critic_params(k_params, total_obs_dim, total_action_dim)
    bf16_elem = _vpu_has_bf16()

    # --- small inference-style batch ---------------------------------------
    batch = 8
    obs = jax.random.normal(k_obs, (batch, total_obs_dim), jnp.float32)
    actions = jax.random.uniform(k_act, (batch, total_action_dim), jnp.float32,
                                 minval=-1.0, maxval=1.0)
    q = critic_forward(obs, actions, params, bf16_elementwise=bf16_elem)
    jax.block_until_ready(q)
    q_ref = critic_reference(obs, actions, params, bf16_elementwise=bf16_elem)
    assert q.shape == (batch, 1)
    assert jnp.allclose(q, q_ref, atol=5e-3, rtol=5e-3), (q, q_ref)

    # --- larger batch: exercises adaptive tiling, padding, multi-step grid --
    batch2 = 1030
    obs2 = jax.random.normal(k_obs2, (batch2, total_obs_dim), jnp.float32)
    actions2 = jax.random.uniform(k_act2, (batch2, total_action_dim), jnp.float32,
                                  minval=-1.0, maxval=1.0)
    q2 = critic_forward(obs2, actions2, params, bf16_elementwise=bf16_elem)
    jax.block_until_ready(q2)
    q2_ref = critic_reference(obs2, actions2, params, bf16_elementwise=bf16_elem)
    assert q2.shape == (batch2, 1)
    assert jnp.allclose(q2, q2_ref, atol=5e-3, rtol=5e-3)

    print("KERNEL_OK")
</pallas_src>

<mosaic_0001>
module attributes {stable_mosaic.version = 11 : i64} {
  func.func @critic_kernel(%arg0: i32, %arg1: memref<16x32xbf16, #tpu.memory_space<vmem>>, %arg2: memref<32x512xbf16, #tpu.memory_space<vmem>>, %arg3: memref<1x512xf32, #tpu.memory_space<vmem>>, %arg4: memref<1x512xf32, #tpu.memory_space<vmem>>, %arg5: memref<1x512xf32, #tpu.memory_space<vmem>>, %arg6: memref<512x256xbf16, #tpu.memory_space<vmem>>, %arg7: memref<1x256xf32, #tpu.memory_space<vmem>>, %arg8: memref<1x256xbf16, #tpu.memory_space<vmem>>, %arg9: memref<1x1xf32, #tpu.memory_space<vmem>>, %arg10: memref<1x1x16xf32, #tpu.memory_space<vmem>>) attributes {dimension_semantics = [#tpu.dimension_semantics<parallel>], iteration_bounds = array<i64: 1>, scalar_prefetch = 0 : i64, scratch_operands = 0 : i64, tpu.core_type = #tpu.core_type<tc>, window_params = [{transform_indices = @transform_0, window_bounds = array<i64: 16, 32>}, {pipeline_mode = #tpu.pipeline_mode<synchronous>, transform_indices = @transform_1, window_bounds = array<i64: 32, 512>}, {pipeline_mode = #tpu.pipeline_mode<synchronous>, transform_indices = @transform_2, window_bounds = array<i64: 1, 512>}, {pipeline_mode = #tpu.pipeline_mode<synchronous>, transform_indices = @transform_3, window_bounds = array<i64: 1, 512>}, {pipeline_mode = #tpu.pipeline_mode<synchronous>, transform_indices = @transform_4, window_bounds = array<i64: 1, 512>}, {pipeline_mode = #tpu.pipeline_mode<synchronous>, transform_indices = @transform_5, window_bounds = array<i64: 512, 256>}, {pipeline_mode = #tpu.pipeline_mode<synchronous>, transform_indices = @transform_6, window_bounds = array<i64: 1, 256>}, {pipeline_mode = #tpu.pipeline_mode<synchronous>, transform_indices = @transform_7, window_bounds = array<i64: 1, 256>}, {pipeline_mode = #tpu.pipeline_mode<synchronous>, transform_indices = @transform_8, window_bounds = array<i64: 1, 1>}, {transform_indices = @transform_9, window_bounds = array<i64: 1, 1, 16>}]} {
    %c0 = arith.constant 0 : index
    %c0_0 = arith.constant 0 : index
    %0 = vector.load %arg1[%c0, %c0_0] : memref<16x32xbf16, #tpu.memory_space<vmem>>, vector<16x32xbf16>
    %c0_1 = arith.constant 0 : index
    %c0_2 = arith.constant 0 : index
    %1 = vector.load %arg2[%c0_1, %c0_2] : memref<32x512xbf16, #tpu.memory_space<vmem>>, vector<32x512xbf16>
    %cst = arith.constant dense<0.000000e+00> : vector<16x512xf32>
    %2 = tpu.matmul %0, %1, %cst {dimension_numbers = #tpu.dot_dimension_numbers<[1], [0], [0], [1], [0, 0, 1, 1], [], []>} : vector<16x32xbf16>, vector<32x512xbf16>, vector<16x512xf32> -> vector<16x512xf32>
    %c0_3 = arith.constant 0 : index
    %c0_4 = arith.constant 0 : index
    %3 = vector.load %arg3[%c0_3, %c0_4] : memref<1x512xf32, #tpu.memory_space<vmem>>, vector<1x512xf32>
    %4 = vector.broadcast %3 : vector<1x512xf32> to vector<16x512xf32>
    %5 = arith.addf %2, %4 : vector<16x512xf32>
    %cst_5 = arith.constant dense<0.000000e+00> : vector<16xf32>
    %6 = vector.multi_reduction <add>, %5, %cst_5 [1] : vector<16x512xf32> to vector<16xf32>
    %7 = vector.shape_cast %6 : vector<16xf32> to vector<16x1xf32>
    %cst_6 = arith.constant 5.120000e+02 : f32
    %8 = vector.broadcast %cst_6 : f32 to vector<16x1xf32>
    %9 = arith.divf %7, %8 : vector<16x1xf32>
    %10 = vector.broadcast %9 : vector<16x1xf32> to vector<16x512xf32>
    %11 = arith.subf %5, %10 : vector<16x512xf32>
    %12 = arith.mulf %11, %11 : vector<16x512xf32>
    %cst_7 = arith.constant dense<0.000000e+00> : vector<16xf32>
    %13 = vector.multi_reduction <add>, %12, %cst_7 [1] : vector<16x512xf32> to vector<16xf32>
    %14 = vector.shape_cast %13 : vector<16xf32> to vector<16x1xf32>
    %cst_8 = arith.constant 5.120000e+02 : f32
    %15 = vector.broadcast %cst_8 : f32 to vector<16x1xf32>
    %16 = arith.divf %14, %15 : vector<16x1xf32>
    %cst_9 = arith.constant 9.99999974E-6 : f32
    %17 = vector.broadcast %cst_9 : f32 to vector<16x1xf32>
    %18 = arith.addf %16, %17 : vector<16x1xf32>
    %19 = math.rsqrt %18 : vector<16x1xf32>
    %20 = vector.broadcast %19 : vector<16x1xf32> to vector<16x512xf32>
    %21 = arith.mulf %11, %20 : vector<16x512xf32>
    %22 = arith.truncf %21 : vector<16x512xf32> to vector<16x512xbf16>
    %c0_10 = arith.constant 0 : index
    %c0_11 = arith.constant 0 : index
    %23 = vector.load %arg4[%c0_10, %c0_11] : memref<1x512xf32, #tpu.memory_space<vmem>>, vector<1x512xf32>
    %24 = arith.truncf %23 : vector<1x512xf32> to vector<1x512xbf16>
    %25 = vector.broadcast %24 : vector<1x512xbf16> to vector<16x512xbf16>
    %26 = arith.mulf %22, %25 : vector<16x512xbf16>
    %c0_12 = arith.constant 0 : index
    %c0_13 = arith.constant 0 : index
    %27 = vector.load %arg5[%c0_12, %c0_13] : memref<1x512xf32, #tpu.memory_space<vmem>>, vector<1x512xf32>
    %28 = arith.truncf %27 : vector<1x512xf32> to vector<1x512xbf16>
    %29 = vector.broadcast %28 : vector<1x512xbf16> to vector<16x512xbf16>
    %30 = arith.addf %26, %29 : vector<16x512xbf16>
    %cst_14 = arith.constant 1.000980e-02 : bf16
    %31 = vector.broadcast %cst_14 : bf16 to vector<16x512xbf16>
    %32 = arith.mulf %31, %30 : vector<16x512xbf16>
    %33 = arith.maximumf %30, %32 : vector<16x512xbf16>
    %c0_15 = arith.constant 0 : index
    %c0_16 = arith.constant 0 : index
    %34 = vector.load %arg6[%c0_15, %c0_16] : memref<512x256xbf16, #tpu.memory_space<vmem>>, vector<512x256xbf16>
    %cst_17 = arith.constant dense<0.000000e+00> : vector<16x256xf32>
    %35 = tpu.matmul %33, %34, %cst_17 {dimension_numbers = #tpu.dot_dimension_numbers<[1], [0], [0], [1], [0, 0, 1, 1], [], []>} : vector<16x512xbf16>, vector<512x256xbf16>, vector<16x256xf32> -> vector<16x256xf32>
    %36 = arith.truncf %35 : vector<16x256xf32> to vector<16x256xbf16>
    %c0_18 = arith.constant 0 : index
    %c0_19 = arith.constant 0 : index
    %37 = vector.load %arg7[%c0_18, %c0_19] : memref<1x256xf32, #tpu.memory_space<vmem>>, vector<1x256xf32>
    %38 = arith.truncf %37 : vector<1x256xf32> to vector<1x256xbf16>
    %39 = vector.broadcast %38 : vector<1x256xbf16> to vector<16x256xbf16>
    %40 = arith.addf %36, %39 : vector<16x256xbf16>
    %cst_20 = arith.constant 1.000980e-02 : bf16
    %41 = vector.broadcast %cst_20 : bf16 to vector<16x256xbf16>
    %42 = arith.mulf %41, %40 : vector<16x256xbf16>
    %43 = arith.maximumf %40, %42 : vector<16x256xbf16>
    %c0_21 = arith.constant 0 : index
    %c0_22 = arith.constant 0 : index
    %44 = vector.load %arg8[%c0_21, %c0_22] : memref<1x256xbf16, #tpu.memory_space<vmem>>, vector<1x256xbf16>
    %cst_23 = arith.constant dense<0.000000e+00> : vector<1x16xf32>
    %45 = tpu.matmul %44, %43, %cst_23 {dimension_numbers = #tpu.dot_dimension_numbers<[1], [1], [0], [0], [0, 0, 1, 0], [], []>} : vector<1x256xbf16>, vector<16x256xbf16>, vector<1x16xf32> -> vector<1x16xf32>
    %c0_24 = arith.constant 0 : index
    %c0_25 = arith.constant 0 : index
    %46 = vector.load %arg9[%c0_24, %c0_25] : memref<1x1xf32, #tpu.memory_space<vmem>>, vector<1x1xf32>
    %47 = vector.broadcast %46 : vector<1x1xf32> to vector<1x16xf32>
    %48 = arith.addf %45, %47 : vector<1x16xf32>
    %49 = vector.shape_cast %48 : vector<1x16xf32> to vector<1x1x16xf32>
    %c0_26 = arith.constant 0 : index
    %c0_27 = arith.constant 0 : index
    %c0_28 = arith.constant 0 : index
    %50 = vector.load %arg10[%c0_26, %c0_27, %c0_28] : memref<1x1x16xf32, #tpu.memory_space<vmem>>, vector<1x1x16xf32>
    tpu.vector_store %arg10[%c0_26, %c0_27, %c0_28], %49 {strides = array<i32>} : memref<1x1x16xf32, #tpu.memory_space<vmem>>, vector<1x1x16xf32>,
    return
  }
  func.func @transform_0(%arg0: i32) -> (i32, i32) {
    %c0_i32 = arith.constant 0 : i32
    %c0_i32_0 = arith.constant 0 : i32
    return %arg0, %c0_i32 : i32, i32
  }
  func.func @transform_1(%arg0: i32) -> (i32, i32) {
    %c0_i32 = arith.constant 0 : i32
    %c0_i32_0 = arith.constant 0 : i32
    %c0_i32_1 = arith.constant 0 : i32
    return %c0_i32, %c0_i32_0 : i32, i32
  }
  func.func @transform_2(%arg0: i32) -> (i32, i32) {
    %c0_i32 = arith.constant 0 : i32
    %c0_i32_0 = arith.constant 0 : i32
    %c0_i32_1 = arith.constant 0 : i32
    return %c0_i32, %c0_i32_0 : i32, i32
  }
  func.func @transform_3(%arg0: i32) -> (i32, i32) {
    %c0_i32 = arith.constant 0 : i32
    %c0_i32_0 = arith.constant 0 : i32
    %c0_i32_1 = arith.constant 0 : i32
    return %c0_i32, %c0_i32_0 : i32, i32
  }
  func.func @transform_4(%arg0: i32) -> (i32, i32) {
    %c0_i32 = arith.constant 0 : i32
    %c0_i32_0 = arith.constant 0 : i32
    %c0_i32_1 = arith.constant 0 : i32
    return %c0_i32, %c0_i32_0 : i32, i32
  }
  func.func @transform_5(%arg0: i32) -> (i32, i32) {
    %c0_i32 = arith.constant 0 : i32
    %c0_i32_0 = arith.constant 0 : i32
    %c0_i32_1 = arith.constant 0 : i32
    return %c0_i32, %c0_i32_0 : i32, i32
  }
  func.func @transform_6(%arg0: i32) -> (i32, i32) {
    %c0_i32 = arith.constant 0 : i32
    %c0_i32_0 = arith.constant 0 : i32
    %c0_i32_1 = arith.constant 0 : i32
    return %c0_i32, %c0_i32_0 : i32, i32
  }
  func.func @transform_7(%arg0: i32) -> (i32, i32) {
    %c0_i32 = arith.constant 0 : i32
    %c0_i32_0 = arith.constant 0 : i32
    %c0_i32_1 = arith.constant 0 : i32
    return %c0_i32, %c0_i32_0 : i32, i32
  }
  func.func @transform_8(%arg0: i32) -> (i32, i32) {
    %c0_i32 = arith.constant 0 : i32
    %c0_i32_0 = arith.constant 0 : i32
    %c0_i32_1 = arith.constant 0 : i32
    return %c0_i32, %c0_i32_0 : i32, i32
  }
  func.func @transform_9(%arg0: i32) -> (i32, i32, i32) {
    %c0_i32 = arith.constant 0 : i32
    %c0_i32_0 = arith.constant 0 : i32
    %c0_i32_1 = arith.constant 0 : i32
    return %arg0, %c0_i32, %c0_i32_0 : i32, i32, i32
  }
}

</mosaic_0001>

<bundles_post_ra>
// kernel: tpu_custom_call.1
= control target key start
LH: loop header
LB: loop body
LE: loop exit
PB: predicated region body
PF: predicated region fallthrough
CT: control target
= control target key end

     0   :  { %s1566_s0 = inlined_call_operand.hbm [shape: bf16[16,32], index: 0, kind: input, shape index: {}]   ;;  %s1567_s1 = inlined_call_operand.hbm [shape: bf16[32,512], index: 1, kind: input, shape index: {}]   ;;  %s1568_s2 = inlined_call_operand.vmem [shape: f32[1,512], index: 2, kind: input, shape index: {}]   ;;  %s1569_s3 = inlined_call_operand.vmem [shape: f32[1,512], index: 3, kind: input, shape index: {}]   ;;  %s1570_s4 = inlined_call_operand.vmem [shape: f32[1,512], index: 4, kind: input, shape index: {}]   ;;  %s1571_s5 = inlined_call_operand.hbm [shape: bf16[512,256], index: 5, kind: input, shape index: {}]   ;;  %s1572_s6 = inlined_call_operand.vmem [shape: f32[1,256], index: 6, kind: input, shape index: {}]   ;;  %s1573_s7 = inlined_call_operand.vmem [shape: bf16[1,256], index: 7, kind: input, shape index: {}]   ;;  %s1574_s8 = inlined_call_operand.<no memory space> [shape: f32[1,1], index: 8, kind: input, shape index: {}]   ;;  %s1575_s9 = inlined_call_operand.hbm [shape: f32[1,1,16], index: 9, kind: output, shape index: {}]  }
   0x1   :  { %v14_v0 = vstv %s1574_s8 }
   0x2   :  { %15 = vst [vmem:[#allocation2] sm:$0x1] %v14_v0 }
   0x3   :  { %16 = vsyncpa [#allocation4], 0 }
   0x4   :  { %17 = vsyncpa [#allocation7], 0 }
   0x5   :  { %18 = vsyncpa [#allocation5], 0  ;;  %s1326_s11 = smov [#allocation6]   ;;  %s1232_s15 = scalar_lea.hbm %s1567_s1, 1024 }
   0x6   :  { %s36_s12 = sshll.u32 %s1326_s11, 4  ;;  %p1233_p0 = scmp.ne.s32.totalorder %s1567_s1, %s1232_s15  ;;  %s37_s12 = int_to_ptr.vmem [resolvable:$true] %s36_s12 }
   0x7   :  { %p1236_p1 = scmp.lt.u32.totalorder %s1232_s15, %s1567_s1 }
   0x9   :  { %p1238_p2 = pnand %p1236_p1, %p1233_p0 }
   0xb   :  { %1241 = shalt.err (!%p1238_p2)
}
   0xc   :  { %s1242_s8 = scalar_lea.vmem %s37_s12, 1024  ;;  %p1247_p4 = scmp.lt.s32.totalorder %s37_s12, %s37_s12 }
   0xd   :  { %p1243_p3 = scmp.ne.s32.totalorder %s37_s12, %s1242_s8  ;;  %p1248_p5 = scmp.lt.s32.totalorder %s1242_s8, %s1242_s8 }
   0xf   :  { %p1249_p6 = por %p1248_p5, %p1247_p4 }
  0x11   :  { %p1250_p7 = pnand %p1249_p6, %p1243_p3 }
  0x13   :  { %1253 = shalt.err (!%p1250_p7)
}
  0x14   :  { %s1327_s20 = smov 256   ;;  %s1328_s21 = smov 16  }
  0x15   :  { %42 = dma.hbm_to_vmem [thread:$0]  %s1567_s1, 1024, %s37_s12, [#allocation7], %s1327_s20, %s1327_s20, %s1328_s21  }
  0x16   :  { %s1329_s24 = smov [#allocation3]   ;;  %s1254_s28 = scalar_lea.hbm %s1566_s0, 128 }
  0x17   :  { %s24_s25 = sshll.u32 %s1329_s24, 4  ;;  %p1255_p8 = scmp.ne.s32.totalorder %s1566_s0, %s1254_s28  ;;  %s25_s25 = int_to_ptr.vmem [resolvable:$true] %s24_s25 }
  0x18   :  { %p1258_p9 = scmp.lt.u32.totalorder %s1254_s28, %s1566_s0 }
  0x1a   :  { %p1260_p10 = pnand %p1258_p9, %p1255_p8 }
  0x1c   :  { %1263 = shalt.err (!%p1260_p10)
}
  0x1d   :  { %s1264_s13 = scalar_lea.vmem %s25_s25, 128  ;;  %p1269_p12 = scmp.lt.s32.totalorder %s25_s25, %s25_s25 }
  0x1e   :  { %p1265_p11 = scmp.ne.s32.totalorder %s25_s25, %s1264_s13  ;;  %p1270_p13 = scmp.lt.s32.totalorder %s1264_s13, %s1264_s13 }
  0x20   :  { %p1271_p0 = por %p1270_p13, %p1269_p12 }
  0x22   :  { %p1272_p1 = pnand %p1271_p0, %p1265_p11 }
  0x24   :  { %1275 = shalt.err (!%p1272_p1)
}
  0x25   :  { %s1330_s1 = smov 64   ;;  %s1331_s12 = smov 4  }
  0x26   :  { %30 = dma.hbm_to_vmem [thread:$0]  %s1566_s0, 128, %s25_s25, [#allocation4], %s1330_s1, %s1330_s1, %s1331_s12  }
  0x27   :  { %s1332_s16 = smov [#allocation8]   ;;  %s1276_s8 = scalar_lea.hbm %s1571_s5, 8192 }
  0x28   :  { %s54_s17 = sshll.u32 %s1332_s16, 4  ;;  %p1277_p2 = scmp.ne.s32.totalorder %s1571_s5, %s1276_s8  ;;  %s55_s17 = int_to_ptr.vmem [resolvable:$true] %s54_s17 }
  0x29   :  { %p1280_p3 = scmp.lt.u32.totalorder %s1276_s8, %s1571_s5 }
  0x2b   :  { %p1282_p4 = pnand %p1280_p3, %p1277_p2 }
  0x2d   :  { %1285 = shalt.err (!%p1282_p4)
}
  0x2e   :  { %s1286_s24 = scalar_lea.vmem %s55_s17, 8192  ;;  %p1291_p6 = scmp.lt.s32.totalorder %s55_s17, %s55_s17 }
  0x2f   :  { %p1287_p5 = scmp.ne.s32.totalorder %s55_s17, %s1286_s24  ;;  %p1292_p7 = scmp.lt.s32.totalorder %s1286_s24, %s1286_s24 }
  0x31   :  { %p1293_p8 = por %p1292_p7, %p1291_p6 }
  0x33   :  { %p1294_p9 = pnand %p1293_p8, %p1287_p5 }
  0x35   :  { %1297 = shalt.err (!%p1294_p9)
}
  0x36   :  { %s1333_s0 = smov 128   ;;  %s1334_s25 = smov 8  }
  0x37   :  { %60 = dma.hbm_to_vmem [thread:$0]  %s1571_s5, 8192, %s55_s17, [#allocation7], %s1333_s0, %s1333_s0, %s1334_s25  }
  0x38   :  { %1320 = dma.done.wait [#allocation4], 128  }
  0x39   :  { %1321 = vsyncadd [#allocation4], 4294967168 }
  0x3a   :  { %1322 = dma.done.wait [#allocation7], 9216  }
  0x3b   :  { %1323 = vsyncadd [#allocation7], 4294958080  ;;  %v1335_v1 = vmov 0   ;;  %v1119_v2 = vld [vmem:[#allocation6 + $0x4] ss:$16 sps:$4 sm:$0xff]   ;;  %v1131_v10 = vld [vmem:[#allocation3] sm:$0xff]   ;;  %v90_v11 = vlaneseq }
  0x3c   :  { %191 = vmatprep.mubr.bf16.mxu0 %v1335_v1  ;;  %234 = vmatprep.mubr.bf16.mxu1 %v1335_v1  ;;  %v1121_v3 = vld [vmem:[#allocation6 + $0xc] ss:$16 sps:$4 sm:$0xff]   ;;  %v1123_v4 = vld [vmem:[#allocation6] ss:$16 sps:$4 sm:$0xff]   ;;  %v1124_v5 = vld [vmem:[#allocation6 + $0x8] ss:$16 sps:$4 sm:$0xff]  }
  0x3d   :  { %1118 = vset.pattern.permute.xlu0 %v1335_v1  ;;  %159 = vmatprep.subr.bf16.mxu0 %v1119_v2  ;;  %v1125_v6 = vld [vmem:[#allocation6 + $0x24] ss:$16 sps:$4 sm:$0xff]   ;;  %v1127_v7 = vld [vmem:[#allocation6 + $0x2c] ss:$16 sps:$4 sm:$0xff]   ;;  %v1129_v8 = vld [vmem:[#allocation6 + $0x20] ss:$16 sps:$4 sm:$0xff]  }
  0x3e   :  { %202 = vmatprep.subr.bf16.mxu1 %v1121_v3  ;;  %160 = vmatpush1.bf16.msra.mxu0 %v1123_v4  ;;  %v1130_v9 = vld [vmem:[#allocation6 + $0x28] ss:$16 sps:$4 sm:$0xff]   ;;  %vm155_vm0 = vcmask 261120   ;;  %v1427_v12 = vshrl.u32 %v90_v11, 7  ;;  %v1134_v45 = vld [vmem:[#allocation8 + $0x4] ss:$8 sps:$4 sm:$0xff]  }
  0x3f   :  { %203 = vmatpush1.bf16.msra.mxu1 %v1124_v5  ;;  %161 = vmatprep.subr.bf16.mxu0 %v1125_v6  ;;  %v88_v14 = vld [vmem:[%s1568_s2] sm:$0xf]  ;;  %v1132_v44 = vld [vmem:[#allocation8] ss:$8 sps:$4 sm:$0xff]   ;;  %v1137_v47 = vld [vmem:[#allocation8 + $0x104] ss:$8 sps:$4 sm:$0xff]  }
  0x40   :  { %204 = vmatprep.subr.bf16.mxu1 %v1127_v7  ;;  %v1430_v13 = vsub.s32 0, %v1427_v12  ;;  %v1436_v15 = vsub.s32 2, %v1427_v12  ;;  %v1439_v16 = vsub.s32 1, %v1427_v12  ;;  %v1445_v20 = vsub.s32 3, %v1427_v12  ;;  %v1135_v46 = vld [vmem:[#allocation8 + $0x100] ss:$8 sps:$4 sm:$0xff]  }
  0x41   :  { %v1140_v48 = vld [vmem:[#allocation8 + $0x14] ss:$8 sps:$4 sm:$0xff]   ;;  %v1138_v50 = vld [vmem:[#allocation8 + $0x10] ss:$8 sps:$4 sm:$0xff]   ;;  %v1146_v52 = vld [vmem:[#allocation8 + $0x24] ss:$8 sps:$4 sm:$0xff]  }
  0x42   :  { %162 = vmatpush1.bf16.msra.mxu0 %v1129_v8  ;;  %v93_v17 = vrot.slane %v88_v14, %v1430_v13  ;;  %v101_v18 = vrot.slane %v88_v14, %v1436_v15  ;;  %v97_v19 = vrot.slane %v88_v14, %v1439_v16  ;;  %v105_v28 = vrot.slane %v88_v14, %v1445_v20  ;;  %v1143_v49 = vld [vmem:[#allocation8 + $0x114] ss:$8 sps:$4 sm:$0xff]   ;;  %v1141_v51 = vld [vmem:[#allocation8 + $0x110] ss:$8 sps:$4 sm:$0xff]   ;;  %v1149_v53 = vld [vmem:[#allocation8 + $0x124] ss:$8 sps:$4 sm:$0xff]  }
  0x43   :  { %205 = vmatpush1.bf16.msra.mxu1 %v1130_v9  ;;  %853 = vmatprep.subr.bf16.mxu0 %v1137_v47  ;;  %v1144_v54 = vld [vmem:[#allocation8 + $0x20] ss:$8 sps:$4 sm:$0xff]   ;;  %v1152_v56 = vld [vmem:[#allocation8 + $0x34] ss:$8 sps:$4 sm:$0xff]   ;;  %v1150_v58 = vld [vmem:[#allocation8 + $0x30] ss:$8 sps:$4 sm:$0xff]  }
  0x44   :  { %810 = vmatprep.subr.bf16.mxu1 %v1134_v45  ;;  %v1147_v55 = vld [vmem:[#allocation8 + $0x120] ss:$8 sps:$4 sm:$0xff]   ;;  %v1155_v57 = vld [vmem:[#allocation8 + $0x134] ss:$8 sps:$4 sm:$0xff]   ;;  %v1153_v59 = vld [vmem:[#allocation8 + $0x130] ss:$8 sps:$4 sm:$0xff]  }
  0x45   :  { %1035 = vmatmul.mubr.msk.bf16.vlgmr.msra.gmra.mrb[0].mxu0 %vm155_vm0, %v1131_v10  ;;  %v1158_v60 = vld [vmem:[#allocation8 + $0x44] ss:$8 sps:$4 sm:$0xff]   ;;  %v1156_v62 = vld [vmem:[#allocation8 + $0x40] ss:$8 sps:$4 sm:$0xff]   ;;  %v1164_v0 = vld [vmem:[#allocation8 + $0x54] ss:$8 sps:$4 sm:$0xff]  }
  0x46   :  { %1036 = vmatmul.mubr.msk.bf16.vlgmr.msra.gmra.mrb[0].mxu1 %vm155_vm0, %v1131_v10  ;;  %854 = vmatpush1.bf16.msra.mxu0 %v1135_v46  ;;  %v1161_v61 = vld [vmem:[#allocation8 + $0x144] ss:$8 sps:$4 sm:$0xff]   ;;  %v1159_v63 = vld [vmem:[#allocation8 + $0x140] ss:$8 sps:$4 sm:$0xff]   ;;  %v1167_v1 = vld [vmem:[#allocation8 + $0x154] ss:$8 sps:$4 sm:$0xff]  }
  0x47   :  { %811 = vmatpush1.bf16.msra.mxu1 %v1132_v44  ;;  %855 = vmatprep.subr.bf16.mxu0 %v1143_v49  ;;  %v1162_v2 = vld [vmem:[#allocation8 + $0x50] ss:$8 sps:$4 sm:$0xff]   ;;  %v1170_v4 = vld [vmem:[#allocation8 + $0x64] ss:$8 sps:$4 sm:$0xff]   ;;  %v1168_v6 = vld [vmem:[#allocation8 + $0x60] ss:$8 sps:$4 sm:$0xff]  }
  0x48   :  { %812 = vmatprep.subr.bf16.mxu1 %v1140_v48  ;;  %v1165_v3 = vld [vmem:[#allocation8 + $0x150] ss:$8 sps:$4 sm:$0xff]   ;;  %v1173_v5 = vld [vmem:[#allocation8 + $0x164] ss:$8 sps:$4 sm:$0xff]   ;;  %v1171_v7 = vld [vmem:[#allocation8 + $0x160] ss:$8 sps:$4 sm:$0xff]  }
  0x49   :  { %v1176_v8 = vld [vmem:[#allocation8 + $0x74] ss:$8 sps:$4 sm:$0xff]   ;;  %v1174_v10 = vld [vmem:[#allocation8 + $0x70] ss:$8 sps:$4 sm:$0xff]   ;;  %v1185_v44 = vld [vmem:[#allocation8 + $0x184] ss:$8 sps:$4 sm:$0xff]  }
  0x4a   :  { %856 = vmatpush1.bf16.msra.mxu0 %v1141_v51  ;;  %v1179_v9 = vld [vmem:[#allocation8 + $0x174] ss:$8 sps:$4 sm:$0xff]   ;;  %v1177_v11 = vld [vmem:[#allocation8 + $0x170] ss:$8 sps:$4 sm:$0xff]   ;;  %v1180_v45 = vld [vmem:[#allocation8 + $0x80] ss:$8 sps:$4 sm:$0xff]  }
  0x4b   :  { %813 = vmatpush1.bf16.msra.mxu1 %v1138_v50  ;;  %857 = vmatprep.subr.bf16.mxu0 %v1149_v53  ;;  %v1183_v46 = vld [vmem:[#allocation8 + $0x180] ss:$8 sps:$4 sm:$0xff]   ;;  %v1188_v47 = vld [vmem:[#allocation8 + $0x94] ss:$8 sps:$4 sm:$0xff]   ;;  %v1186_v49 = vld [vmem:[#allocation8 + $0x90] ss:$8 sps:$4 sm:$0xff]  }
  0x4c   :  { %814 = vmatprep.subr.bf16.mxu1 %v1146_v52  ;;  %v1191_v48 = vld [vmem:[#allocation8 + $0x194] ss:$8 sps:$4 sm:$0xff]   ;;  %v1189_v50 = vld [vmem:[#allocation8 + $0x190] ss:$8 sps:$4 sm:$0xff]   ;;  %v1194_v51 = vld [vmem:[#allocation8 + $0xa4] ss:$8 sps:$4 sm:$0xff]  }
  0x4d   :  { %v1197_v52 = vld [vmem:[#allocation8 + $0x1a4] ss:$8 sps:$4 sm:$0xff]   ;;  %v1192_v53 = vld [vmem:[#allocation8 + $0xa0] ss:$8 sps:$4 sm:$0xff]   ;;  %vm1008_vm1 = vcmask 122880  }
  0x4e   :  { %858 = vmatpush1.bf16.msra.mxu0 %v1147_v55  ;;  %v1200_v55 = vld [vmem:[#allocation8 + $0xb4] ss:$8 sps:$4 sm:$0xff]  }
  0x4f   :  { %815 = vmatpush1.bf16.msra.mxu1 %v1144_v54  ;;  %859 = vmatprep.subr.bf16.mxu0 %v1155_v57  ;;  %v1195_v54 = vld [vmem:[#allocation8 + $0x1a0] ss:$8 sps:$4 sm:$0xff]   ;;  %v1198_v57 = vld [vmem:[#allocation8 + $0xb0] ss:$8 sps:$4 sm:$0xff]  }
  0x50   :  { %816 = vmatprep.subr.bf16.mxu1 %v1152_v56  ;;  %v1203_v56 = vld [vmem:[#allocation8 + $0x1b4] ss:$8 sps:$4 sm:$0xff]  }
  0x52   :  { %860 = vmatpush1.bf16.msra.mxu0 %v1153_v59  ;;  %v1206_v59 = vld [vmem:[#allocation8 + $0xc4] ss:$8 sps:$4 sm:$0xff]  }
  0x53   :  { %817 = vmatpush1.bf16.msra.mxu1 %v1150_v58  ;;  %861 = vmatprep.subr.bf16.mxu0 %v1161_v61  ;;  %v1201_v58 = vld [vmem:[#allocation8 + $0x1b0] ss:$8 sps:$4 sm:$0xff]   ;;  %v1204_v61 = vld [vmem:[#allocation8 + $0xc0] ss:$8 sps:$4 sm:$0xff]  }
  0x54   :  { %818 = vmatprep.subr.bf16.mxu1 %v1158_v60  ;;  %v1209_v60 = vld [vmem:[#allocation8 + $0x1c4] ss:$8 sps:$4 sm:$0xff]  }
  0x56   :  { %862 = vmatpush1.bf16.msra.mxu0 %v1159_v63  ;;  %v1212_v63 = vld [vmem:[#allocation8 + $0xd4] ss:$8 sps:$4 sm:$0xff]  }
  0x57   :  { %819 = vmatpush1.bf16.msra.mxu1 %v1156_v62  ;;  %863 = vmatprep.subr.bf16.mxu0 %v1167_v1  ;;  %v1207_v62 = vld [vmem:[#allocation8 + $0x1c0] ss:$8 sps:$4 sm:$0xff]   ;;  %v1210_v1 = vld [vmem:[#allocation8 + $0xd0] ss:$8 sps:$4 sm:$0xff]  }
  0x58   :  { %820 = vmatprep.subr.bf16.mxu1 %v1164_v0  ;;  %v1215_v0 = vld [vmem:[#allocation8 + $0x1d4] ss:$8 sps:$4 sm:$0xff]  }
  0x5a   :  { %864 = vmatpush1.bf16.msra.mxu0 %v1165_v3  ;;  %v1218_v3 = vld [vmem:[#allocation8 + $0xe4] ss:$8 sps:$4 sm:$0xff]  }
  0x5b   :  { %821 = vmatpush1.bf16.msra.mxu1 %v1162_v2  ;;  %865 = vmatprep.subr.bf16.mxu0 %v1173_v5  ;;  %v1213_v2 = vld [vmem:[#allocation8 + $0x1d0] ss:$8 sps:$4 sm:$0xff]   ;;  %v1216_v5 = vld [vmem:[#allocation8 + $0xe0] ss:$8 sps:$4 sm:$0xff]  }
  0x5c   :  { %822 = vmatprep.subr.bf16.mxu1 %v1170_v4  ;;  %v1221_v4 = vld [vmem:[#allocation8 + $0x1e4] ss:$8 sps:$4 sm:$0xff]  }
  0x5e   :  { %866 = vmatpush1.bf16.msra.mxu0 %v1171_v7  ;;  %v1224_v7 = vld [vmem:[#allocation8 + $0xf4] ss:$8 sps:$4 sm:$0xff]  }
  0x5f   :  { %823 = vmatpush1.bf16.msra.mxu1 %v1168_v6  ;;  %867 = vmatprep.subr.bf16.mxu0 %v1179_v9  ;;  %v1219_v6 = vld [vmem:[#allocation8 + $0x1e0] ss:$8 sps:$4 sm:$0xff]   ;;  %v1222_v9 = vld [vmem:[#allocation8 + $0xf0] ss:$8 sps:$4 sm:$0xff]  }
  0x60   :  { %824 = vmatprep.subr.bf16.mxu1 %v1176_v8  ;;  %v1227_v8 = vld [vmem:[#allocation8 + $0x1f4] ss:$8 sps:$4 sm:$0xff]  }
  0x62   :  { %868 = vmatpush1.bf16.msra.mxu0 %v1177_v11 }
  0x63   :  { %825 = vmatpush1.bf16.msra.mxu1 %v1174_v10  ;;  %869 = vmatprep.subr.bf16.mxu0 %v1185_v44  ;;  %v1225_v10 = vld [vmem:[#allocation8 + $0x1f0] ss:$8 sps:$4 sm:$0xff]  }
  0x66   :  { %870 = vmatpush1.bf16.msra.mxu0 %v1183_v46 }
  0x67   :  { %871 = vmatprep.subr.bf16.mxu0 %v1191_v48 }
  0x6a   :  { %872 = vmatpush1.bf16.msra.mxu0 %v1189_v50 }
  0x6b   :  { %873 = vmatprep.subr.bf16.mxu0 %v1197_v52 }
  0x6e   :  { %874 = vmatpush1.bf16.msra.mxu0 %v1195_v54 }
  0x6f   :  { %875 = vmatprep.subr.bf16.mxu0 %v1203_v56 }
  0x72   :  { %876 = vmatpush1.bf16.msra.mxu0 %v1201_v58 }
  0x73   :  { %877 = vmatprep.subr.bf16.mxu0 %v1209_v60 }
  0x76   :  { %878 = vmatpush1.bf16.msra.mxu0 %v1207_v62 }
  0x77   :  { %879 = vmatprep.subr.bf16.mxu0 %v1215_v0 }
  0x7a   :  { %880 = vmatpush1.bf16.msra.mxu0 %v1213_v2 }
  0x7b   :  { %881 = vmatprep.subr.bf16.mxu0 %v1221_v4 }
  0x7e   :  { %882 = vmatpush1.bf16.msra.mxu0 %v1219_v6 }
  0x7f   :  { %883 = vmatprep.subr.bf16.mxu0 %v1227_v8 }
  0x82   :  { %884 = vmatpush1.bf16.msra.mxu0 %v1225_v10 }
 0x118   :  { %v193_v21 = vpop.f32.mrb[0].mxu0 }
 0x119   :  { %v236_v22 = vpop.f32.mrb[0].mxu1  ;;  %v1447_v23 = vadd.f32 %v193_v21, %v93_v17  ;;  %v195_v24 = vpop.f32.mrb[1].mxu0 }
 0x11a   :  { %v238_v25 = vpop.f32.mrb[1].mxu1  ;;  %v1449_v26 = vadd.f32 %v236_v22, %v101_v18  ;;  %v1451_v27 = vadd.f32 %v195_v24, %v97_v19  ;;  %v197_v29 = vpop.f32.mrb[2].mxu0 }
 0x11b   :  { %v240_v30 = vpop.f32.mrb[2].mxu1  ;;  %v1454_v31 = vadd.f32 %v197_v29, %v93_v17  ;;  %v199_v32 = vpop.f32.mrb[3].mxu0  ;;  %v1460_v36 = vadd.f32 %v238_v25, %v105_v28 }
 0x11c   :  { %v242_v33 = vpop.f32.mrb[3].mxu1  ;;  %v245_v34 = vadd.f32 %v1451_v27, %v1447_v23  ;;  %v1458_v35 = vadd.f32 %v199_v32, %v97_v19  ;;  %v1462_v37 = vadd.f32 %v240_v30, %v101_v18 }
 0x11d   :  { %v1469_v42 = vadd.f32 %v242_v33, %v105_v28 }
 0x11e   :  { %v250_v38 = vadd.f32 %v1458_v35, %v1454_v31  ;;  %v246_v39 = vadd.f32 %v245_v34, %v1449_v26 }
 0x120   :  { %v247_v40 = vadd.f32 %v246_v39, %v1460_v36  ;;  %v251_v41 = vadd.f32 %v250_v38, %v1462_v37 }
 0x122   :  { %248 = vadd.xlane.f32.xlu0 %v247_v40  ;;  %v252_v43 = vadd.f32 %v251_v41, %v1469_v42 }
 0x126   :  { %253 = vadd.xlane.f32.xlu0 %v252_v43 }
 0x1af   :  { %v249_v14 = vpop.xlane.xlu0 %248 }
 0x1b0   :  { %v256_v17 = vmul.f32 0.001953125, %v249_v14 }
 0x1b2   :  { %v1473_v18 = vsub.f32 %v1447_v23, %v256_v17  ;;  %v1476_v19 = vsub.f32 %v1451_v27, %v256_v17  ;;  %v1479_v21 = vsub.f32 %v1449_v26, %v256_v17  ;;  %v1482_v24 = vsub.f32 %v1460_v36, %v256_v17  ;;  %v302_v17 = vld [vmem:[%s1569_s3] sm:$0xf] }
 0x1b3   :  { %v254_v22 = vpop.xlane.xlu0 %253 }
 0x1b4   :  { %v257_v25 = vmul.f32 0.001953125, %v254_v22  ;;  %v266_v28 = vmul.f32 %v1473_v18, %v1473_v18  ;;  %v267_v29 = vmul.f32 %v1476_v19, %v1476_v19  ;;  %v268_v23 = vmul.f32 %v1479_v21, %v1479_v21 }
 0x1b5   :  { %v269_v33 = vmul.f32 %v1482_v24, %v1482_v24 }
 0x1b6   :  { %v1491_v27 = vsub.f32 %v1454_v31, %v257_v25  ;;  %v1494_v26 = vsub.f32 %v1458_v35, %v257_v25  ;;  %v274_v30 = vadd.f32 %v267_v29, %v266_v28  ;;  %v1497_v32 = vsub.f32 %v1462_v37, %v257_v25  ;;  %v360_v29 = vld [vmem:[%s1570_s4] sm:$0xf] }
 0x1b7   :  { %v1502_v36 = vsub.f32 %v1469_v42, %v257_v25  ;;  %v1182_v42 = vld [vmem:[#allocation8 + $0x84] ss:$8 sps:$4 sm:$0xff]   ;;  %v315_v28 = vrot.slane %v302_v17, %v1436_v15 }
 0x1b8   :  { %v275_v34 = vadd.f32 %v274_v30, %v268_v23  ;;  %v270_v38 = vmul.f32 %v1491_v27, %v1491_v27  ;;  %v271_v31 = vmul.f32 %v1494_v26, %v1494_v26  ;;  %v272_v35 = vmul.f32 %v1497_v32, %v1497_v32  ;;  %826 = vmatprep.subr.bf16.mxu1 %v1182_v42 }
 0x1b9   :  { %v273_v37 = vmul.f32 %v1502_v36, %v1502_v36  ;;  %827 = vmatpush1.bf16.msra.mxu1 %v1180_v45  ;;  %v319_v30 = vrot.slane %v302_v17, %v1445_v20 }
 0x1ba   :  { %v276_v39 = vadd.f32 %v275_v34, %v269_v33  ;;  %v279_v40 = vadd.f32 %v271_v31, %v270_v38  ;;  %828 = vmatprep.subr.bf16.mxu1 %v1188_v47  ;;  %v311_v33 = vrot.slane %v302_v17, %v1439_v16  ;;  %v307_v34 = vrot.slane %v302_v17, %v1430_v13 }
 0x1bb   :  { %v373_v31 = vrot.slane %v360_v29, %v1436_v15 }
 0x1bc   :  { %277 = vadd.xlane.f32.xlu1 %v276_v39  ;;  %v280_v41 = vadd.f32 %v279_v40, %v272_v35  ;;  %v369_v39 = vrot.slane %v360_v29, %v1439_v16  ;;  %v377_v35 = vrot.slane %v360_v29, %v1445_v20  ;;  %v365_v40 = vrot.slane %v360_v29, %v1430_v13 }
 0x1bd   :  { %829 = vmatpush1.bf16.msra.mxu1 %v1186_v49  ;;  %v324_v42 = vpack.c.bf16 %v307_v34, %v307_v34  ;;  %v384_v44 = vpack.c.bf16 %v373_v31, %v373_v31 }
 0x1be   :  { %v281_v43 = vadd.f32 %v280_v41, %v273_v37  ;;  %830 = vmatprep.subr.bf16.mxu1 %v1194_v51  ;;  %v326_v37 = vpack.c.bf16 %v315_v28, %v315_v28  ;;  %v327_v41 = vpack.c.bf16 %v319_v30, %v319_v30  ;;  %v383_v45 = vpack.c.bf16 %v369_v39, %v369_v39 }
 0x1bf   :  { %v385_v46 = vpack.c.bf16 %v377_v35, %v377_v35  ;;  %v382_v47 = vpack.c.bf16 %v365_v40, %v365_v40  ;;  %v329_v51 = vpack.i.b16 %v324_v42, %v324_v42  ;;  %v401_v52 = vpack.i.b16 %v384_v44, %v384_v44 }
 0x1c0   :  { %282 = vadd.xlane.f32.xlu1 %v281_v43  ;;  %v325_v43 = vpack.c.bf16 %v311_v33, %v311_v33  ;;  %v343_v48 = vpack.i.b16 %v326_v37, %v326_v37  ;;  %v350_v50 = vpack.i.b16 %v327_v41, %v327_v41  ;;  %v1336_v33 = vmov 1966171168   ;;  %v933_v41 = vld [vmem:[#allocation2] sm:$0x1] }
 0x1c1   :  { %831 = vmatpush1.bf16.msra.mxu1 %v1192_v53  ;;  %v394_v53 = vpack.i.b16 %v383_v45, %v383_v45  ;;  %v408_v54 = vpack.i.b16 %v385_v46, %v385_v46  ;;  %v953_v34 = vunpack.c.l.s4 %v1336_v33  ;;  %936 = vperm.xlu0 %1118, %v933_v41  }
 0x1c2   :  { %832 = vmatprep.subr.bf16.mxu1 %v1200_v55  ;;  %v336_v49 = vpack.i.b16 %v325_v43, %v325_v43  ;;  %v387_v55 = vpack.i.b16 %v382_v47, %v382_v47  ;;  %v355_v56 = vrot.slane %v350_v50, %v1430_v13  ;;  %v348_v58 = vrot.slane %v343_v48, %v1430_v13  ;;  %v898_v43 = vld [vmem:[%s1572_s6] sm:$0x3]  ;;  %s1337_s6 = smov [#allocation9]  }
 0x1c3   :  { %v399_v4 = vrot.slane %v394_v53, %v1430_v13  ;;  %v954_v39 = vunpack.c.0.s8 %v953_v34  ;;  %v903_v42 = vrot.slane %v898_v43, %v1430_v13  ;;  %v907_v44 = vrot.slane %v898_v43, %v1439_v16 }
 0x1c4   :  { %v341_v20 = vrot.slane %v336_v49, %v1430_v13 }
 0x1c5   :  { %833 = vmatpush1.bf16.msra.mxu1 %v1198_v57  ;;  %v334_v57 = vrot.slane %v329_v51, %v1430_v13  ;;  %v957_v35 = vsub.s32 %v954_v39, %v1427_v12  ;;  %v910_v45 = vpack.c.bf16 %v903_v42, %v903_v42  ;;  %v911_v46 = vpack.c.bf16 %v907_v44, %v907_v44 }
 0x1c6   :  { %834 = vmatprep.subr.bf16.mxu1 %v1206_v59 }
 0x1c7   :  { %v913_v47 = vpack.i.b16 %v910_v45, %v910_v45  ;;  %v920_v50 = vpack.i.b16 %v911_v46, %v911_v46 }
 0x1c9   :  { %835 = vmatpush1.bf16.msra.mxu1 %v1204_v61  ;;  %v925_v16 = vrot.slane %v920_v50, %v1430_v13 }
 0x1ca   :  { %836 = vmatprep.subr.bf16.mxu1 %v1212_v63 }
 0x1cd   :  { %837 = vmatpush1.bf16.msra.mxu1 %v1210_v1 }
 0x1ce   :  { %838 = vmatprep.subr.bf16.mxu1 %v1218_v3 }
 0x1d1   :  { %839 = vmatpush1.bf16.msra.mxu1 %v1216_v5  ;;  %v413_v5 = vrot.slane %v408_v54, %v1430_v13 }
 0x1d2   :  { %840 = vmatprep.subr.bf16.mxu1 %v1224_v7 }
 0x1d5   :  { %841 = vmatpush1.bf16.msra.mxu1 %v1222_v9 }
 0x249   :  { %v278_v11 = vpop.xlane.xlu1 %277 }
 0x24a   :  { %v284_v14 = vmul.f32 0.001953125, %v278_v11 }
 0x24c   :  { %v286_v22 = vadd.f32 1e-05, %v284_v14 }
 0x24d   :  { %v283_v25 = vpop.xlane.xlu1 %282 }
 0x24e   :  { %v285_v23 = vmul.f32 0.001953125, %v283_v25  ;;  %1228 = vrsqrt.f32 %v286_v22 }
 0x250   :  { %v287_v38 = vadd.f32 1e-05, %v285_v23 }
 0x252   :  { %1230 = vrsqrt.f32 %v287_v38  ;;  %v1101_v38 = vld.sshfl [vmem:[%s1573_s7] sm:$0x11 pattern:$0x75316420]  ;;  %s1016_s7 = sshll.u32 %s1337_s6, 4  ;;  %s1017_s7 = int_to_ptr.vmem [resolvable:$true] %s1016_s7 }
 0x253   :  { %v951_v31 = vcombine.high %v1101_v38, %v1101_v38  ;;  %v958_v37 = vrot.slane %v1101_v38, %v957_v35  ;;  %s1298_s1 = scalar_lea.vmem %s1017_s7, 16  ;;  %s1302_s12 = scalar_lea.vmem %s1017_s7, 32 }
 0x254   :  { %p1299_p10 = scmp.ne.s32.totalorder %s1017_s7, %s1298_s1  ;;  %p1303_p11 = scmp.lt.s32.totalorder %s1017_s7, %s1017_s7 }
 0x255   :  { %v965_v40 = vrot.slane %v951_v31, %v957_v35  ;;  %p1304_p12 = scmp.lt.s32.totalorder %s1302_s12, %s1298_s1 }
 0x257   :  { %p1305_p13 = por %p1304_p12, %p1303_p11 }
 0x258   :  { %v1229_v15 = vpop.eup %1228 }
 0x259   :  { %v291_v60 = vmul.f32 %v1229_v15, %v1476_v19  ;;  %v293_v61 = vmul.f32 %v1229_v15, %v1482_v24  ;;  %v290_v62 = vmul.f32 %v1229_v15, %v1473_v18  ;;  %v292_v63 = vmul.f32 %v1229_v15, %v1479_v21  ;;  %p1306_p0 = pnand %p1305_p13, %p1299_p10 }
 0x25a   :  { %v392_v19 = vrot.slane %v387_v55, %v1430_v13  ;;  %v406_v24 = vrot.slane %v401_v52, %v1430_v13 }
 0x25c   :  { %v1231_v59 = vpop.eup %1230 }
 0x25d   :  { %v295_v0 = vmul.f32 %v1231_v59, %v1494_v26  ;;  %v297_v1 = vmul.f32 %v1231_v59, %v1502_v36  ;;  %v294_v2 = vmul.f32 %v1231_v59, %v1491_v27  ;;  %v296_v3 = vmul.f32 %v1231_v59, %v1497_v32 }
 0x25f   :  { %v299_v6 = vpack.c.bf16 %v295_v0, %v291_v60  ;;  %v301_v18 = vpack.c.bf16 %v297_v1, %v293_v61  ;;  %v298_v7 = vpack.c.bf16 %v294_v2, %v290_v62  ;;  %v300_v21 = vpack.c.bf16 %v296_v3, %v292_v63  ;;  %v937_v3 = vpop.permute.xlu0 %936 }
 0x261   :  { %v357_v8 = vmul.bf16 %v341_v20, %v299_v6  ;;  %v359_v26 = vmul.bf16 %v355_v56, %v301_v18  ;;  %v356_v9 = vmul.bf16 %v334_v57, %v298_v7  ;;  %v358_v36 = vmul.bf16 %v348_v58, %v300_v21 }
 0x262   :  { %v918_v20 = vrot.slane %v913_v47, %v1430_v13 }
 0x263   :  { %v415_v10 = vadd.bf16 %v399_v4, %v357_v8  ;;  %v417_v27 = vadd.bf16 %v413_v5, %v359_v26  ;;  %v414_v11 = vadd.bf16 %v392_v19, %v356_v9  ;;  %v416_v32 = vadd.bf16 %v406_v24, %v358_v36 }
 0x264   :  { %v942_v4 = vrot.slane %v937_v3, %v1430_v13 }
 0x265   :  { %v419_v14 = vmul.bf16 1009007652, %v415_v10  ;;  %v421_v17 = vmul.bf16 1009007652, %v417_v27  ;;  %v418_v22 = vmul.bf16 1009007652, %v414_v11 }
 0x266   :  { %v420_v25 = vmul.bf16 1009007652, %v416_v32 }
 0x267   :  { %v423_v28 = vmax.bf16 %v419_v14, %v415_v10  ;;  %v425_v29 = vmax.bf16 %v421_v17, %v417_v27  ;;  %v422_v23 = vmax.bf16 %v418_v22, %v414_v11 }
 0x268   :  { %v424_v30 = vmax.bf16 %v420_v25, %v416_v32 }
 0x269   :  { %842 = vmatprep.mubr.bf16.mxu1 %v423_v28  ;;  %885 = vmatprep.mubr.bf16.mxu0 %v425_v29 }
 0x26a   :  { %843 = vmatmul.mubr.bf16.vlgmr.msra.gmra.mrb[4].mxu1 %v422_v23  ;;  %886 = vmatmul.mubr.bf16.vlgmr.msra.gmra.mrb[4].mxu0 %v424_v30 }
 0x26b   :  { %1000 = vmatprep.mubr.bf16.mxu1 %v965_v40 }
 0x33d   :  { %v844_v48 = vpop.f32.mrb[4].mxu1  ;;  %v887_v49 = vpop.f32.mrb[4].mxu0 }
 0x33e   :  { %v888_v12 = vadd.f32 %v887_v49, %v844_v48  ;;  %v846_v51 = vpop.f32.mrb[5].mxu1  ;;  %v889_v15 = vpop.f32.mrb[5].mxu0 }
 0x33f   :  { %v890_v52 = vadd.f32 %v889_v15, %v846_v51  ;;  %v848_v53 = vpop.f32.mrb[6].mxu1  ;;  %v891_v54 = vpop.f32.mrb[6].mxu0 }
 0x340   :  { %v892_v55 = vadd.f32 %v891_v54, %v848_v53  ;;  %v850_v56 = vpop.f32.mrb[7].mxu1  ;;  %v893_v57 = vpop.f32.mrb[7].mxu0 }
 0x341   :  { %v894_v58 = vadd.f32 %v893_v57, %v850_v56 }
 0x342   :  { %v896_v59 = vpack.c.bf16 %v892_v55, %v888_v12 }
 0x343   :  { %v897_v60 = vpack.c.bf16 %v894_v58, %v890_v52 }
 0x344   :  { %v926_v61 = vadd.bf16 %v918_v20, %v896_v59 }
 0x345   :  { %v927_v62 = vadd.bf16 %v925_v16, %v897_v60 }
 0x346   :  { %v928_v63 = vmul.bf16 1009007652, %v926_v61 }
 0x347   :  { %v929_v0 = vmul.bf16 1009007652, %v927_v62 }
 0x348   :  { %v930_v2 = vmax.bf16 %v928_v63, %v926_v61 }
 0x349   :  { %v931_v1 = vmax.bf16 %v929_v0, %v927_v62 }
 0x34b   :  { %968 = vmatprep.subr.bf16.mxu1 %v931_v1 }
 0x34c   :  { %969 = vmatpush1.bf16.xpose.msra.mxu1 %v930_v2 }
 0x353   :  { %1001 = vmatmul.mubr.bf16.vlgmr.msra.gmra.mrb[8].mxu1 %v958_v37 }
 0x426   :  { %v1002_v5 = vpop.f32.mrb[8].mxu1 }
 0x427   :  { %v1003_v19 = vadd.f32 %v1002_v5, %v942_v4  ;;  %v1004_v24 = vpop.f32.mrb[9].mxu1 }
 0x428   :  { %v1005_v6 = vpop.f32.mrb[10].mxu1 }
 0x429   :  { %v1006_v18 = vpop.f32.mrb[11].mxu1  ;;  %1009 = vst.msk [vmem:[#allocation9] sm:$0x1] %vm1008_vm1, %v1003_v19 }
 0x42a   :  { %1309 = shalt.err (!%p1306_p0)
}
 0x42b   :  { %s1310_s16 = scalar_lea.hbm %s1575_s9, 16 }
 0x42c   :  { %p1311_p1 = scmp.ne.s32.totalorder %s1575_s9, %s1310_s16  ;;  %p1314_p2 = scmp.lt.u32.totalorder %s1310_s16, %s1575_s9 }
 0x42e   :  { %p1316_p3 = pnand %p1314_p2, %p1311_p1 }
 0x430   :  { %1319 = shalt.err (!%p1316_p3)
}
 0x431   :  { %1019 = dma.vmem_to_hbm [thread:$0]  %s1017_s7, 16, %s1575_s9, [#allocation5]  }
 0x432   :  { %1324 = dma.done.wait [#allocation5], 16  }
 0x433   :  { %1325 = vsyncadd [#allocation5], 4294967280 }
 0x434   :  { %1023 = vsyncpa [#allocation4], 1 }
 0x435   :  { %1024 = vsyncpa [#allocation7], 1 }
 0x436   :  { %1025 = vsyncpa [#allocation5], 1 }

</bundles_post_ra>
